<compile_context>
chip_gen: v7x
topology: tpu7x:2x2x1
jax: 0.10.0
libtpu: 0.0.40
codegen_flags: <defaults>
</compile_context>

<pallas_src>
import functools

import jax
import jax.numpy as jnp
from jax.experimental import pallas as pl
from jax.experimental.pallas import tpu as pltpu

_EMB = 8  # turn-embedding width (nn.Linear(2, 8))


def _round_up(n, m=8):
    return ((n + m - 1) // m) * m


def _polvalnet_kernel(x_ref, turn_ref, pack_ref, pv_ref, *,
                      Dx, H1, H2, D_OUT, r_w1x, r_w1t, r_w2, r_wh, r_vec):
    E = _EMB
    x = x_ref[...]                                   # (B, Dx)  f32
    t = turn_ref[...]                                # (B, 2)   f32

    # ---- packed parameter views (all slices are static / compile-time) ----
    w1x = pack_ref[r_w1x:r_w1x + Dx, 0:H1]           # (Dx, H1)
    w1t = pack_ref[r_w1t:r_w1t + E, 0:H1]            # (E,  H1)
    w2 = pack_ref[r_w2:r_w2 + H1, 0:H2]              # (H1, H2)
    wh = pack_ref[r_wh:r_wh + H2, 0:D_OUT + 1]       # (H2, D_OUT+1) fused p|v head

    w_emb0 = pack_ref[r_vec + 0:r_vec + 1, 0:E]      # (1, E)
    w_emb1 = pack_ref[r_vec + 1:r_vec + 2, 0:E]      # (1, E)
    b_emb = pack_ref[r_vec + 2:r_vec + 3, 0:E]       # (1, E)
    b1 = pack_ref[r_vec + 3:r_vec + 4, 0:H1]         # (1, H1)
    b2 = pack_ref[r_vec + 4:r_vec + 5, 0:H2]         # (1, H2)
    b_head = pack_ref[r_vec + 5:r_vec + 6, 0:D_OUT + 1]  # (1, D_OUT+1)

    # ---- turn embedding on the VPU (K=2 matmul is a wasted MXU pass) ----
    t_emb = t[:, 0:1] * w_emb0 + t[:, 1:2] * w_emb1 + b_emb
    t_emb = jnp.maximum(t_emb, 0.0)                  # (B, E)

    # ---- h1 = relu(cat([x, t_emb]) @ w1 + b1), concat-free ----
    h1 = jnp.dot(x, w1x, preferred_element_type=jnp.float32)
    h1 = h1 + jnp.dot(t_emb, w1t, preferred_element_type=jnp.float32)
    h1 = jnp.maximum(h1 + b1, 0.0)                   # (B, H1)

    # ---- h2 = relu(h1 @ w2 + b2) ----
    h2 = jnp.dot(h1, w2, preferred_element_type=jnp.float32) + b2
    h2 = jnp.maximum(h2, 0.0)                        # (B, H2)

    # ---- fused heads: sigmoid on cols [:D_OUT], tanh on the last column ----
    logits = jnp.dot(h2, wh, preferred_element_type=jnp.float32) + b_head
    col = jax.lax.broadcasted_iota(jnp.int32, logits.shape, 1)
    pv_ref[...] = jnp.where(col < D_OUT,
                            jax.nn.sigmoid(logits),
                            jnp.tanh(logits))        # (B, D_OUT+1)


def pack_params(params, Dx, H1, H2, D_OUT):
    """Pack all weights/biases into one (rows, W_cols) f32 buffer.

    Layout (row blocks, each block start rounded up to a multiple of 8
    sublanes so every in-kernel slice is sublane-aligned):
        w1_x (Dx,H1) | w1_t (8,H1) | w2 (H1,H2) | w_head (H2,D_OUT+1) |
        [w_emb row0; w_emb row1; b_emb; b1; b2; b_head]  (6 vector rows)
    """
    E = _EMB
    W_cols = max(H1, H2, D_OUT + 1, E)

    def block(a, rows):
        return jnp.pad(a, ((0, rows - a.shape[0]), (0, W_cols - a.shape[1])))

    w1 = params["w1"]                                # (Dx+E, H1), pre-transposed
    w1x, w1t = w1[:Dx], w1[Dx:]
    w_head = jnp.concatenate([params["w3p"], params["w3v"]], axis=1)  # (H2, D_OUT+1)
    b_head = jnp.concatenate([params["b3p"], params["b3v"]], axis=1)  # (1, D_OUT+1)

    vec_rows = jnp.concatenate([
        block(params["w_emb"][0:1], 1),
        block(params["w_emb"][1:2], 1),
        block(params["b_emb"], 1),
        block(params["b1"], 1),
        block(params["b2"], 1),
        block(b_head, 1),
    ], axis=0)                                       # (6, W_cols)

    n_w1x, n_w1t = _round_up(Dx), _round_up(E)
    n_w2, n_wh = _round_up(H1), _round_up(H2)
    n_vec = _round_up(6)

    pack = jnp.concatenate([
        block(w1x, n_w1x),
        block(w1t, n_w1t),
        block(params["w2"], n_w2),
        block(w_head, n_wh),
        block(vec_rows, n_vec),
    ], axis=0).astype(jnp.float32)

    offsets = dict(
        r_w1x=0,
        r_w1t=n_w1x,
        r_w2=n_w1x + n_w1t,
        r_wh=n_w1x + n_w1t + n_w2,
        r_vec=n_w1x + n_w1t + n_w2 + n_wh,
    )
    return pack, offsets


def polvalnet_fc_forward(x, turn_to_play, pack, offsets, *, Dx, H1, H2, D_OUT):
    """x: (B, Dx), turn_to_play: (B, 2) -> (p_out (B, D_OUT), v_out (B, 1))."""
    x = x.astype(jnp.float32)
    turn_to_play = turn_to_play.astype(jnp.float32)
    B = x.shape[0]

    kernel = functools.partial(_polvalnet_kernel,
                               Dx=Dx, H1=H1, H2=H2, D_OUT=D_OUT, **offsets)

    vmem_spec = pl.BlockSpec(memory_space=pltpu.MemorySpace.VMEM)

    flops = 2 * B * (Dx * H1 + _EMB * H1 + H1 * H2 + H2 * (D_OUT + 1)) \
        + 4 * B * _EMB
    transcendentals = 2 * B * (D_OUT + 1)            # sigmoid + tanh per column
    bytes_accessed = 4 * (x.size + turn_to_play.size + pack.size
                          + B * (D_OUT + 1))

    pv = pl.pallas_call(
        kernel,
        out_shape=jax.ShapeDtypeStruct((B, D_OUT + 1), jnp.float32),
        in_specs=[vmem_spec, vmem_spec, vmem_spec],
        out_specs=vmem_spec,
        cost_estimate=pl.CostEstimate(flops=flops,
                                      transcendentals=transcendentals,
                                      bytes_accessed=bytes_accessed),
    )(x, turn_to_play, pack)

    # Split the fused lane-contiguous output outside the kernel (cheap XLA slice).
    return pv[:, :D_OUT], pv[:, D_OUT:]


def init_params(key, d_x, h1, h2, d_out):
    """PyTorch-Linear-style init (uniform +/- 1/sqrt(fan_in)).

    Weights are stored pre-transposed as (in_features, out_features)."""
    d_in = d_x + _EMB  # cat([x, relu(turn_embedding)], dim=-1)

    def linear(key, fan_in, fan_out):
        kw, kb = jax.random.split(key)
        bound = 1.0 / jnp.sqrt(fan_in)
        w = jax.random.uniform(kw, (fan_in, fan_out), jnp.float32, -bound, bound)
        b = jax.random.uniform(kb, (1, fan_out), jnp.float32, -bound, bound)
        return w, b

    k_emb, k1, k2, k3p, k3v = jax.random.split(key, 5)
    w_emb, b_emb = linear(k_emb, 2, _EMB)
    w1, b1 = linear(k1, d_in, h1)
    w2, b2 = linear(k2, h1, h2)
    w3p, b3p = linear(k3p, h2, d_out)
    w3v, b3v = linear(k3v, h2, 1)
    return dict(w_emb=w_emb, b_emb=b_emb, w1=w1, b1=b1, w2=w2, b2=b2,
                w3p=w3p, b3p=b3p, w3v=w3v, b3v=b3v)


if __name__ == "__main__":
    # d_in = Dx + 8 (concat of x with the 8-dim relu'd turn embedding).
    B, Dx, H1, H2, D_OUT = 8, 24, 32, 32, 16

    key = jax.random.PRNGKey(0)
    k_params, k_x, k_turn = jax.random.split(key, 3)

    params = init_params(k_params, Dx, H1, H2, D_OUT)
    x = jax.random.normal(k_x, (B, Dx), jnp.float32)
    turn_to_play = jax.random.bernoulli(k_turn, 0.5, (B, 2)).astype(jnp.float32)

    # Pack parameters once (host/XLA side); the kernel then sees 3 buffers.
    pack, offsets = pack_params(params, Dx, H1, H2, D_OUT)

    p_out, v_out = polvalnet_fc_forward(x, turn_to_play, pack, offsets,
                                        Dx=Dx, H1=H1, H2=H2, D_OUT=D_OUT)
    jax.block_until_ready((p_out, v_out))

    # Pure-JAX reference (same math as the PyTorch module) for sanity.
    t_emb = jnp.maximum(turn_to_play @ params["w_emb"] + params["b_emb"], 0.0)
    inp = jnp.concatenate([x, t_emb], axis=-1)
    h1 = jnp.maximum(inp @ params["w1"] + params["b1"], 0.0)
    h2 = jnp.maximum(h1 @ params["w2"] + params["b2"], 0.0)
    p_ref = jax.nn.sigmoid(h2 @ params["w3p"] + params["b3p"])
    v_ref = jnp.tanh(h2 @ params["w3v"] + params["b3v"])
    assert jnp.allclose(p_out, p_ref, atol=1e-5), "p_out mismatch"
    assert jnp.allclose(v_out, v_ref, atol=1e-5), "v_out mismatch"
    assert p_out.shape == (B, D_OUT) and v_out.shape == (B, 1)

    print("KERNEL_OK")
</pallas_src>

<mosaic_0001>
module attributes {stable_mosaic.version = 11 : i64} {
  func.func @_polvalnet_kernel(%arg0: memref<8x24xf32, #tpu.memory_space<vmem>>, %arg1: memref<8x2xf32, #tpu.memory_space<vmem>>, %arg2: memref<104x32xf32, #tpu.memory_space<vmem>>, %arg3: memref<8x17xf32, #tpu.memory_space<vmem>>) attributes {dimension_semantics = [], scalar_prefetch = 0 : i64, scratch_operands = 0 : i64, tpu.core_type = #tpu.core_type<tc>} {
    %c0 = arith.constant 0 : index
    %c0_0 = arith.constant 0 : index
    %0 = vector.load %arg0[%c0, %c0_0] : memref<8x24xf32, #tpu.memory_space<vmem>>, vector<8x24xf32>
    %c0_1 = arith.constant 0 : index
    %c0_2 = arith.constant 0 : index
    %1 = vector.load %arg1[%c0_1, %c0_2] : memref<8x2xf32, #tpu.memory_space<vmem>>, vector<8x2xf32>
    %c0_3 = arith.constant 0 : index
    %c0_4 = arith.constant 0 : index
    %2 = vector.load %arg2[%c0_3, %c0_4] : memref<104x32xf32, #tpu.memory_space<vmem>>, vector<24x32xf32>
    %c24 = arith.constant 24 : index
    %c0_5 = arith.constant 0 : index
    %3 = vector.load %arg2[%c24, %c0_5] : memref<104x32xf32, #tpu.memory_space<vmem>>, vector<8x32xf32>
    %c32 = arith.constant 32 : index
    %c0_6 = arith.constant 0 : index
    %4 = vector.load %arg2[%c32, %c0_6] : memref<104x32xf32, #tpu.memory_space<vmem>>, vector<32x32xf32>
    %c64 = arith.constant 64 : index
    %c0_7 = arith.constant 0 : index
    %5 = vector.load %arg2[%c64, %c0_7] : memref<104x32xf32, #tpu.memory_space<vmem>>, vector<32x17xf32>
    %c96 = arith.constant 96 : index
    %c0_8 = arith.constant 0 : index
    %6 = vector.load %arg2[%c96, %c0_8] : memref<104x32xf32, #tpu.memory_space<vmem>>, vector<1x8xf32>
    %c97 = arith.constant 97 : index
    %c0_9 = arith.constant 0 : index
    %7 = vector.load %arg2[%c97, %c0_9] : memref<104x32xf32, #tpu.memory_space<vmem>>, vector<1x8xf32>
    %c98 = arith.constant 98 : index
    %c0_10 = arith.constant 0 : index
    %8 = vector.load %arg2[%c98, %c0_10] : memref<104x32xf32, #tpu.memory_space<vmem>>, vector<1x8xf32>
    %c99 = arith.constant 99 : index
    %c0_11 = arith.constant 0 : index
    %9 = vector.load %arg2[%c99, %c0_11] : memref<104x32xf32, #tpu.memory_space<vmem>>, vector<1x32xf32>
    %c100 = arith.constant 100 : index
    %c0_12 = arith.constant 0 : index
    %10 = vector.load %arg2[%c100, %c0_12] : memref<104x32xf32, #tpu.memory_space<vmem>>, vector<1x32xf32>
    %c101 = arith.constant 101 : index
    %c0_13 = arith.constant 0 : index
    %11 = vector.load %arg2[%c101, %c0_13] : memref<104x32xf32, #tpu.memory_space<vmem>>, vector<1x17xf32>
    %12 = vector.extract_strided_slice %1 {offsets = [0, 0], sizes = [8, 1], strides = [1, 1]} : vector<8x2xf32> to vector<8x1xf32>
    %13 = vector.broadcast %12 : vector<8x1xf32> to vector<8x8xf32>
    %14 = vector.broadcast %6 : vector<1x8xf32> to vector<8x8xf32>
    %15 = arith.mulf %13, %14 : vector<8x8xf32>
    %16 = vector.extract_strided_slice %1 {offsets = [0, 1], sizes = [8, 1], strides = [1, 1]} : vector<8x2xf32> to vector<8x1xf32>
    %17 = vector.broadcast %16 : vector<8x1xf32> to vector<8x8xf32>
    %18 = vector.broadcast %7 : vector<1x8xf32> to vector<8x8xf32>
    %19 = arith.mulf %17, %18 : vector<8x8xf32>
    %20 = arith.addf %15, %19 : vector<8x8xf32>
    %21 = vector.broadcast %8 : vector<1x8xf32> to vector<8x8xf32>
    %22 = arith.addf %20, %21 : vector<8x8xf32>
    %cst = arith.constant 0.000000e+00 : f32
    %23 = vector.broadcast %cst : f32 to vector<8x8xf32>
    %24 = arith.maximumf %22, %23 : vector<8x8xf32>
    %cst_14 = arith.constant dense<0.000000e+00> : vector<8x32xf32>
    %25 = tpu.matmul %0, %2, %cst_14 {dimension_numbers = #tpu.dot_dimension_numbers<[1], [0], [0], [1], [0, 0, 1, 1], [], []>} : vector<8x24xf32>, vector<24x32xf32>, vector<8x32xf32> -> vector<8x32xf32>
    %cst_15 = arith.constant dense<0.000000e+00> : vector<8x32xf32>
    %26 = tpu.matmul %24, %3, %cst_15 {dimension_numbers = #tpu.dot_dimension_numbers<[1], [0], [0], [1], [0, 0, 1, 1], [], []>} : vector<8x8xf32>, vector<8x32xf32>, vector<8x32xf32> -> vector<8x32xf32>
    %27 = arith.addf %25, %26 : vector<8x32xf32>
    %28 = vector.broadcast %9 : vector<1x32xf32> to vector<8x32xf32>
    %29 = arith.addf %27, %28 : vector<8x32xf32>
    %cst_16 = arith.constant 0.000000e+00 : f32
    %30 = vector.broadcast %cst_16 : f32 to vector<8x32xf32>
    %31 = arith.maximumf %29, %30 : vector<8x32xf32>
    %cst_17 = arith.constant dense<0.000000e+00> : vector<8x32xf32>
    %32 = tpu.matmul %31, %4, %cst_17 {dimension_numbers = #tpu.dot_dimension_numbers<[1], [0], [0], [1], [0, 0, 1, 1], [], []>} : vector<8x32xf32>, vector<32x32xf32>, vector<8x32xf32> -> vector<8x32xf32>
    %33 = vector.broadcast %10 : vector<1x32xf32> to vector<8x32xf32>
    %34 = arith.addf %32, %33 : vector<8x32xf32>
    %cst_18 = arith.constant 0.000000e+00 : f32
    %35 = vector.broadcast %cst_18 : f32 to vector<8x32xf32>
    %36 = arith.maximumf %34, %35 : vector<8x32xf32>
    %cst_19 = arith.constant dense<0.000000e+00> : vector<8x17xf32>
    %37 = tpu.matmul %36, %5, %cst_19 {dimension_numbers = #tpu.dot_dimension_numbers<[1], [0], [0], [1], [0, 0, 1, 1], [], []>} : vector<8x32xf32>, vector<32x17xf32>, vector<8x17xf32> -> vector<8x17xf32>
    %38 = vector.broadcast %11 : vector<1x17xf32> to vector<8x17xf32>
    %39 = arith.addf %37, %38 : vector<8x17xf32>
    %40 = tpu.iota {dimensions = array<i32: 1>} : vector<8x17xi32>
    %c16_i32 = arith.constant 16 : i32
    %41 = vector.broadcast %c16_i32 : i32 to vector<8x17xi32>
    %42 = arith.cmpi slt, %40, %41 : vector<8x17xi32>
    %43 = arith.negf %39 : vector<8x17xf32>
    %44 = math.exp %43 : vector<8x17xf32>
    %cst_20 = arith.constant 1.000000e+00 : f32
    %45 = vector.broadcast %cst_20 : f32 to vector<8x17xf32>
    %46 = arith.addf %45, %44 : vector<8x17xf32>
    %47 = arith.divf %45, %46 : vector<8x17xf32>
    %48 = math.tanh %39 : vector<8x17xf32>
    %49 = arith.select %42, %47, %48 : vector<8x17xi1>, vector<8x17xf32>
    %c0_21 = arith.constant 0 : index
    %c0_22 = arith.constant 0 : index
    %50 = vector.load %arg3[%c0_21, %c0_22] : memref<8x17xf32, #tpu.memory_space<vmem>>, vector<8x17xf32>
    tpu.vector_store %arg3[%c0_21, %c0_22], %49 {strides = array<i32>} : memref<8x17xf32, #tpu.memory_space<vmem>>, vector<8x17xf32>,
    return
  }
}

</mosaic_0001>

<bundles_post_ra>
// kernel: tpu_custom_call.1
= control target key start
LH: loop header
LB: loop body
LE: loop exit
PB: predicated region body
PF: predicated region fallthrough
CT: control target
= control target key end

     0   :  { %v514_v1 = vmov 0   ;;  %s616_s0 = inlined_call_operand.vmem [shape: f32[8,24], index: 0, kind: input, shape index: {}]   ;;  %s617_s1 = inlined_call_operand.vmem [shape: f32[8,2], index: 1, kind: input, shape index: {}]   ;;  %s618_s2 = inlined_call_operand.vmem [shape: f32[104,32], index: 2, kind: input, shape index: {}]   ;;  %s619_s3 = inlined_call_operand.hbm [shape: f32[8,17], index: 3, kind: output, shape index: {}]  }
   0x1   :  { %v16_v0 = vld [vmem:[%s617_s1] sm:$0xff]  ;;  %482 = vset.pattern.permute.xlu0 %v514_v1 }
   0x2   :  { %8 = vsyncpa [#allocation3], 0  ;;  %37 = vperm.xlu0 %482, %v16_v0   ;;  %v515_v2 = vmov 1   ;;  %v17_v3 = vld [vmem:[%s618_s2] sm:$0xff]  ;;  %v18_v4 = vld [vmem:[%s618_s2 + $0x8] sm:$0xff]  ;;  %v516_v6 = vmov 0.0|0.0   ;;  %v371_v53 = vlaneseq }
   0x3   :  { %v462_v5 = vpack.c.bf16 %v18_v4, %v17_v3  ;;  %461 = vmatprep.subr.bf16.mxu1 %v516_v6  ;;  %v517_v7 = vmov 0.0   ;;  %v19_v8 = vld [vmem:[%s618_s2 + $0x10] sm:$0xff]  ;;  %vm518_vm0 = vmmov 0   ;;  %v20_v9 = vld [vmem:[%s618_s2 + $0x18] sm:$0xff]  ;;  %v15_v10 = vld [vmem:[%s616_s0] sm:$0xff]  ;;  %vm135_vm1 = vcmask 195584  }
   0x4   :  { %425 = vmatprep.subr.mxu0 %v517_v7  ;;  %436 = vmatprep.mubr.msk.f32.mxu1 %vm518_vm0, %v517_v7  ;;  %v398_v12 = vld [vmem:[%s618_s2 + $0x60] ss:$0 sm:$0xff]  ;;  %v399_v13 = vld [vmem:[%s618_s2 + $0x61] ss:$0 sm:$0xff]  ;;  %v400_v17 = vld [vmem:[%s618_s2 + $0x62] ss:$0 sm:$0xff] }
   0x5   :  { %463 = vmatpush3.bf16.msra.mxu1 %v462_v5  ;;  %426 = vmatpush3.msra.mxu0 %v20_v9  ;;  %vm61_vm2 = vcmask 64512   ;;  %v21_v21 = vld [vmem:[%s618_s2 + $0x20] sm:$0xff]  ;;  %v22_v22 = vld [vmem:[%s618_s2 + $0x28] sm:$0xff]  ;;  %v23_v26 = vld [vmem:[%s618_s2 + $0x30] sm:$0xff]  ;;  %vm219_vm3 = vcmask 261120   ;;  %v372_v54 = vand.u32 127, %v371_v53 }
   0x6   :  { %483 = vset.pattern.permute.xlu0 %v515_v2  ;;  %434 = vmatprep.subr.mxu1 %v517_v7  ;;  %v465_v23 = vpack.c.bf16 %v22_v22, %v21_v21  ;;  %v24_v27 = vld [vmem:[%s618_s2 + $0x38] sm:$0xff]  ;;  %v25_v29 = vld [vmem:[%s618_s2 + $0x40] sm:$0xff]  ;;  %v26_v30 = vld [vmem:[%s618_s2 + $0x48] sm:$0xff]  ;;  %s519_s22 = smov [#allocation2]   ;;  %vm382_vm5 = vcmask 138240  }
   0x7   :  { %46 = vperm.xlu0 %483, %v16_v0   ;;  %427 = vmatprep.mubr.msk.f32.mxu0 %vm518_vm0, %v517_v7  ;;  %v468_v28 = vpack.c.bf16 %v24_v27, %v23_v26  ;;  %v471_v31 = vpack.c.bf16 %v26_v30, %v25_v29  ;;  %v403_v32 = vld [vmem:[%s618_s2 + $0x63] ss:$0 sm:$0xff]  ;;  %v27_v38 = vld [vmem:[%s618_s2 + $0x50] sm:$0xff]  ;;  %v28_v39 = vld [vmem:[%s618_s2 + $0x58] sm:$0xff]  ;;  %s390_s23 = sshll.u32 %s519_s22, 4  ;;  %vm373_vm4 = vcmp.lt.s32.totalorder %v372_v54, 16  ;;  %s391_s23 = int_to_ptr.vmem [resolvable:$true] %s390_s23 }
   0x8   :  { %464 = vmatprep.subr.bf16.mxu0 %v516_v6  ;;  %v474_v40 = vpack.c.bf16 %v28_v39, %v27_v38  ;;  %v404_v41 = vld [vmem:[%s618_s2 + $0x64] ss:$0 sm:$0xff]  ;;  %v406_v46 = vld [vmem:[%s618_s2 + $0x65] ss:$0 sm:$0xff]  ;;  %s490_s2 = scalar_lea.vmem %s391_s23, 128  ;;  %p495_p1 = scmp.lt.s32.totalorder %s391_s23, %s391_s23 }
   0x9   :  { %435 = vmatpush3.msra.mxu1 %v19_v8  ;;  %p491_p0 = scmp.ne.s32.totalorder %s391_s23, %s490_s2  ;;  %p496_p2 = scmp.lt.s32.totalorder %s490_s2, %s490_s2 }
   0xa   :  { %437 = vmatmul.mubr.msk.f32.vlgmr.msra.gmra.mrb[0].mxu1 %vm135_vm1, %v15_v10  ;;  %470 = vmatprep.subr.bf16.mxu1 %v516_v6 }
   0xb   :  { %458 = vmatprep.mubr.msk.f32.mxu1 %vm518_vm0, %v517_v7  ;;  %472 = vmatpush3.bf16.msra.mxu1 %v471_v31  ;;  %p497_p3 = por %p496_p2, %p495_p1 }
   0xc   :  { %473 = vmatprep.subr.bf16.mxu1 %v516_v6 }
   0xd   :  { %p498_p4 = pnand %p497_p3, %p491_p0 }
   0xf   :  { %475 = vmatpush3.bf16.msra.mxu1 %v474_v40 }
  0x81   :  { %v38_v11 = vpop.permute.xlu0 %37 }
  0x82   :  { %v44_v15 = vmul.f32 %v398_v12, %v38_v11 }
  0x86   :  { %v47_v14 = vpop.permute.xlu0 %46 }
  0x87   :  { %v53_v16 = vmul.f32 %v399_v13, %v47_v14 }
  0x89   :  { %v54_v18 = vadd.f32 %v53_v16, %v44_v15 }
  0x8b   :  { %v59_v19 = vadd.f32 %v400_v17, %v54_v18 }
  0x8d   :  { %v60_v20 = vmax.f32 %v59_v19, 0.0 }
  0x8f   :  { %428 = vmatmul.mubr.msk.f32.vlgmr.msra.gmra.mrb[0].mxu0 %vm61_vm2, %v60_v20 }
  0x90   :  { %447 = vmatprep.mubr.msk.f32.mxu0 %vm518_vm0, %v517_v7  ;;  %466 = vmatpush3.bf16.msra.mxu0 %v465_v23 }
  0x91   :  { %467 = vmatprep.subr.bf16.mxu0 %v516_v6 }
  0x94   :  { %469 = vmatpush3.bf16.msra.mxu0 %v468_v28 }
  0xdd   :  { %v205_v24 = vpop.f32.mrb[0].mxu1 }
  0xde   :  { %v438_v25 = vpop.f32.mrb[1].mxu1 }
 0x162   :  { %v131_v33 = vpop.f32.mrb[0].mxu0 }
 0x163   :  { %v206_v34 = vadd.f32 %v205_v24, %v131_v33  ;;  %v429_v35 = vpop.f32.mrb[1].mxu0 }
 0x165   :  { %v213_v36 = vadd.f32 %v403_v32, %v206_v34 }
 0x167   :  { %v214_v37 = vmax.f32 %v213_v36, 0.0 }
 0x169   :  { %448 = vmatmul.mubr.msk.f32.vlgmr.msra.gmra.mrb[2].mxu0 %vm219_vm3, %v214_v37 }
 0x23c   :  { %v289_v42 = vpop.f32.mrb[2].mxu0 }
 0x23d   :  { %v290_v43 = vadd.f32 %v404_v41, %v289_v42  ;;  %v449_v44 = vpop.f32.mrb[3].mxu0 }
 0x23f   :  { %v293_v45 = vmax.f32 %v290_v43, 0.0 }
 0x241   :  { %459 = vmatmul.mubr.msk.f32.vlgmr.msra.gmra.mrb[2].mxu1 %vm219_vm3, %v293_v45 }
 0x314   :  { %v367_v47 = vpop.f32.mrb[2].mxu1 }
 0x315   :  { %v368_v48 = vadd.f32 %v406_v46, %v367_v47  ;;  %v460_v49 = vpop.f32.mrb[3].mxu1 }
 0x317   :  { %v408_v50 = vmul.f32 -1.442695, %v368_v48 }
 0x319   :  { %484 = vpow2.f32 %v408_v50 }
 0x31a   :  { %486 = vtanh.f32 %v368_v48 }
 0x323   :  { %v485_v51 = vpop.eup %484 }
 0x324   :  { %v377_v52 = vadd.f32 1.0, %v485_v51  ;;  %v487_v55 = vpop.eup %486 }
 0x326   :  { %488 = vrcp.f32 %v377_v52 }
 0x330   :  { %v489_v56 = vpop.eup %488 }
 0x331   :  { %v381_v57 = vsel %vm373_vm4, %v489_v56, %v487_v55 }
 0x332   :  { %383 = vst.msk [vmem:[#allocation2] sm:$0xff] %vm382_vm5, %v381_v57 }
 0x333   :  { %501 = shalt.err (!%p498_p4)
}
 0x334   :  { %s502_s26 = scalar_lea.hbm %s619_s3, 128 }
 0x335   :  { %p503_p5 = scmp.ne.s32.totalorder %s619_s3, %s502_s26  ;;  %p506_p6 = scmp.lt.u32.totalorder %s502_s26, %s619_s3 }
 0x337   :  { %p508_p7 = pnand %p506_p6, %p503_p5 }
 0x339   :  { %511 = shalt.err (!%p508_p7)
}
 0x33a   :  { %393 = dma.vmem_to_hbm [thread:$0]  %s391_s23, 128, %s619_s3, [#allocation3]  }
 0x33b   :  { %512 = dma.done.wait [#allocation3], 128  }
 0x33c   :  { %513 = vsyncadd [#allocation3], 4294967168 }
 0x33d   :  { %397 = vsyncpa [#allocation3], 1 }

</bundles_post_ra>
